<compile_context>
chip_gen: v6e
topology: v6e:2x2x1
jax: 0.10.0
libtpu: 0.0.40
codegen_flags: <defaults>
</compile_context>

<pallas_src>
import math
import functools

import jax
import jax.numpy as jnp
from jax import lax
from jax.experimental import pallas as pl
from jax.experimental.pallas import tpu as pltpu

# ----------------------- model config (small, consistent) -------------------
BATCH = 2
SEQ = 8
HIDDEN = 32
NUM_HEADS = 4
HEAD_DIM = HIDDEN // NUM_HEADS
INTERMEDIATE = 64
LN_EPS = 1e-12  # BERT default layer_norm_eps

_INV_SQRT2 = 0.7071067811865476


def _gelu_exact(x):
    # HF BERT default hidden_act = "gelu" (erf form); stays f32.
    return 0.5 * x * (1.0 + lax.erf(x * _INV_SQRT2))


def _layernorm(x, gamma, beta, eps):
    mean = jnp.mean(x, axis=-1, keepdims=True)
    var = jnp.mean(jnp.square(x - mean), axis=-1, keepdims=True)
    inv = lax.rsqrt(var + eps)
    return (x - mean) * inv * gamma + beta


# ------------------------------- Pallas kernel -------------------------------
def bert_layer_kernel(
    x_ref,        # (S, H)  hidden states for this batch element (f32)
    mask_ref,     # (1, S)  additive per-key attention mask for this batch
    wqkv_ref,     # (H, 3H) fused Q|K|V weight (scale folded into Q cols), mm_dtype
    bqkv_ref,     # (1, 3H) fused Q|K|V bias   (scale folded into Q part), f32
    wo_ref,       # (H, H)  mm_dtype
    wi_ref,       # (H, I)  mm_dtype
    bi_ref,       # (1, I)  f32
    w2_ref,       # (I, H)  mm_dtype
    vec_ref,      # (8, H)  rows: 0=bo, 1=b2, 2=ln1_g, 3=ln1_b, 4=ln2_g, 5=ln2_b, 6/7=pad
    out_ref,      # (S, H)
    *, num_heads, head_dim, hidden, ln_eps, mm_dtype, approx_recip,
):
    x = x_ref[...]          # (S, H) f32
    mask = mask_ref[...]    # (1, S) f32, broadcasts over query rows

    # --- BertSelfAttention: fused Q/K/V projection (single MXU push) ---
    qkv = jnp.dot(x.astype(mm_dtype), wqkv_ref[...],
                  preferred_element_type=jnp.float32) + bqkv_ref[...]
    q = qkv[:, :hidden]                 # already scaled by 1/sqrt(head_dim)
    k = qkv[:, hidden:2 * hidden]
    v = qkv[:, 2 * hidden:]

    # Transpose K ONCE (one small XLU transpose), slice per head below —
    # avoids any per-head transpose materialization inside the loop.
    q_mm = q.astype(mm_dtype)
    kT_mm = k.T.astype(mm_dtype)        # (H, S)
    v_mm = v.astype(mm_dtype)

    # Per-head attention, statically unrolled; context tiles stay in registers.
    head_ctx = []
    for h in range(num_heads):
        lo = h * head_dim
        s = jnp.dot(q_mm[:, lo:lo + head_dim], kT_mm[lo:lo + head_dim, :],
                    preferred_element_type=jnp.float32) + mask          # (S, S)
        s = s - jnp.max(s, axis=-1, keepdims=True)
        p = jnp.exp(s)
        # approx=True -> single EUP vrcp (idle slot); approx=False is the
        # exact Newton-refined path used for the strict f32 check.
        p = p * pl.reciprocal(jnp.sum(p, axis=-1, keepdims=True),
                              approx=approx_recip)
        # attention-probs dropout: identity in eval mode
        head_ctx.append(jnp.dot(p.astype(mm_dtype), v_mm[:, lo:lo + head_dim],
                                preferred_element_type=jnp.float32))

    # Lane-concat the per-head contexts in registers (no VMEM scratch round-trip).
    ctx = jnp.concatenate(head_ctx, axis=-1)                             # (S, H) f32

    # --- BertSelfOutput: dense + residual + LayerNorm (f32) ---
    attn = jnp.dot(ctx.astype(mm_dtype), wo_ref[...],
                   preferred_element_type=jnp.float32) + vec_ref[0:1, :]
    h1 = _layernorm(attn + x, vec_ref[2:3, :], vec_ref[3:4, :], ln_eps)

    # --- BertIntermediate (the spec module): dense + GELU ---
    inter = _gelu_exact(
        jnp.dot(h1.astype(mm_dtype), wi_ref[...],
                preferred_element_type=jnp.float32) + bi_ref[...])

    # --- BertOutput: dense + residual + LayerNorm (f32) ---
    ffn = jnp.dot(inter.astype(mm_dtype), w2_ref[...],
                  preferred_element_type=jnp.float32) + vec_ref[1:2, :]
    out_ref[...] = _layernorm(ffn + h1, vec_ref[4:5, :], vec_ref[5:6, :],
                              ln_eps).astype(out_ref.dtype)


# --------------------------------- wrapper -----------------------------------
def bert_layer_pallas(x, attention_mask, params, *,
                      matmul_dtype=jnp.float32, approx_softmax_recip=False):
    """x: (B, S, H) float32; attention_mask: (B, S) additive float mask.

    matmul_dtype=jnp.bfloat16 + approx_softmax_recip=True is the
    performance configuration (bf16 MXU operands, EUP vrcp softmax);
    the default f32/exact configuration matches the PyTorch f32 module.
    """
    B, S, H = x.shape
    scale = 1.0 / math.sqrt(HEAD_DIM)

    t = lambda w: jnp.asarray(w).T              # PyTorch (out,in) -> (in,out)
    row = lambda b: jnp.asarray(b).reshape(1, -1)

    # Fused QKV weight/bias with the attention scale constant-folded into Q.
    wqkv = jnp.concatenate([t(params["wq"]) * scale, t(params["wk"]),
                            t(params["wv"])], axis=1).astype(matmul_dtype)
    bqkv = jnp.concatenate([row(params["bq"]) * scale, row(params["bk"]),
                            row(params["bv"])], axis=1)                 # f32

    wo = t(params["wo"]).astype(matmul_dtype)
    wi = t(params["wi"]).astype(matmul_dtype)
    w2 = t(params["w2"]).astype(matmul_dtype)
    bi = row(params["bi"])                                              # f32

    # Pack all (H,)-sized vectors into one (8, H) tile (single DMA window).
    zeros_h = jnp.zeros((H,), jnp.float32)
    vecs = jnp.stack([params["bo"], params["b2"],
                      params["ln1_g"], params["ln1_b"],
                      params["ln2_g"], params["ln2_b"],
                      zeros_h, zeros_h], axis=0)

    # Per-batch (1, S) key mask row — no dense (B*S, B*S) mask, no cross-batch
    # block mask, no cross-batch score FLOPs.
    mask3d = attention_mask.reshape(B, 1, S).astype(jnp.float32)

    kernel = functools.partial(
        bert_layer_kernel,
        num_heads=NUM_HEADS, head_dim=HEAD_DIM, hidden=H, ln_eps=LN_EPS,
        mm_dtype=matmul_dtype, approx_recip=approx_softmax_recip,
    )

    # Weights: full-array blocks with constant index maps -> DMA'd once
    # (block index never changes across the grid), resident in VMEM.
    def full_spec(arr):
        nd = arr.ndim
        return pl.BlockSpec(arr.shape, lambda b, _nd=nd: (0,) * _nd)

    out3d = pl.pallas_call(
        kernel,
        out_shape=jax.ShapeDtypeStruct((B, S, H), x.dtype),
        grid=(B,),
        in_specs=[
            pl.BlockSpec((None, S, H), lambda b: (b, 0, 0)),   # x (per batch)
            pl.BlockSpec((None, 1, S), lambda b: (b, 0, 0)),   # mask row
            full_spec(wqkv), full_spec(bqkv), full_spec(wo),
            full_spec(wi), full_spec(bi), full_spec(w2), full_spec(vecs),
        ],
        out_specs=pl.BlockSpec((None, S, H), lambda b: (b, 0, 0)),
        compiler_params=pltpu.CompilerParams(
            dimension_semantics=("parallel",)),   # v7x: one batch elem per TC
    )(x, mask3d, wqkv, bqkv, wo, wi, bi, w2, vecs)
    return out3d


# --------------------------- pure-JAX reference ------------------------------
def bert_layer_ref(x, attention_mask, p):
    B, S, H = x.shape
    def lin(v, w, b):  # PyTorch Linear: v @ w.T + b
        return v @ w.T + b
    q = lin(x, p["wq"], p["bq"]).reshape(B, S, NUM_HEADS, HEAD_DIM).transpose(0, 2, 1, 3)
    k = lin(x, p["wk"], p["bk"]).reshape(B, S, NUM_HEADS, HEAD_DIM).transpose(0, 2, 1, 3)
    v = lin(x, p["wv"], p["bv"]).reshape(B, S, NUM_HEADS, HEAD_DIM).transpose(0, 2, 1, 3)
    scores = (q @ jnp.swapaxes(k, -1, -2)) / math.sqrt(HEAD_DIM)
    scores = scores + attention_mask[:, None, None, :]
    probs = jax.nn.softmax(scores, axis=-1)
    ctx = (probs @ v).transpose(0, 2, 1, 3).reshape(B, S, H)
    attn = lin(ctx, p["wo"], p["bo"])
    h1 = _layernorm(attn + x, p["ln1_g"], p["ln1_b"], LN_EPS)
    inter = _gelu_exact(lin(h1, p["wi"], p["bi"]))
    ffn = lin(inter, p["w2"], p["b2"])
    return _layernorm(ffn + h1, p["ln2_g"], p["ln2_b"], LN_EPS)


# ----------------------------------- main ------------------------------------
if __name__ == "__main__":
    key = jax.random.PRNGKey(0)
    ks = jax.random.split(key, 16)

    def w(k, shape, scale=0.05):
        return (scale * jax.random.normal(k, shape)).astype(jnp.float32)

    params = {
        "wq": w(ks[0], (HIDDEN, HIDDEN)), "bq": w(ks[1], (HIDDEN,)),
        "wk": w(ks[2], (HIDDEN, HIDDEN)), "bk": w(ks[3], (HIDDEN,)),
        "wv": w(ks[4], (HIDDEN, HIDDEN)), "bv": w(ks[5], (HIDDEN,)),
        "wo": w(ks[6], (HIDDEN, HIDDEN)), "bo": w(ks[7], (HIDDEN,)),
        "ln1_g": jnp.ones((HIDDEN,), jnp.float32),
        "ln1_b": jnp.zeros((HIDDEN,), jnp.float32),
        "wi": w(ks[8], (INTERMEDIATE, HIDDEN)), "bi": w(ks[9], (INTERMEDIATE,)),
        "w2": w(ks[10], (HIDDEN, INTERMEDIATE)), "b2": w(ks[11], (HIDDEN,)),
        "ln2_g": jnp.ones((HIDDEN,), jnp.float32),
        "ln2_b": jnp.zeros((HIDDEN,), jnp.float32),
    }

    x = jax.random.normal(ks[12], (BATCH, SEQ, HIDDEN), dtype=jnp.float32)
    # additive attention mask: 0 = attend, -10000 = masked (last 2 tokens of batch 1)
    attention_mask = jnp.zeros((BATCH, SEQ), jnp.float32)
    attention_mask = attention_mask.at[1, -2:].set(-10000.0)

    ref = bert_layer_ref(x, attention_mask, params)

    # Precision configuration: f32 matmuls, exact reciprocal -> matches the
    # PyTorch f32 module at 1e-4.
    out_f32 = jax.block_until_ready(bert_layer_pallas(x, attention_mask, params))
    assert out_f32.shape == (BATCH, SEQ, HIDDEN)
    err_f32 = float(jnp.max(jnp.abs(out_f32 - ref)))
    assert jnp.allclose(out_f32, ref, atol=1e-4, rtol=1e-4), err_f32

    # Performance configuration (review items): bf16 MXU operands + approx
    # EUP-vrcp softmax reciprocal; bf16's 8-bit mantissa limits agreement with
    # the f32 reference, so the tolerance is loosened accordingly.
    out_bf16 = jax.block_until_ready(bert_layer_pallas(
        x, attention_mask, params,
        matmul_dtype=jnp.bfloat16, approx_softmax_recip=True))
    err_bf16 = float(jnp.max(jnp.abs(out_bf16 - ref)))
    assert jnp.allclose(out_bf16, ref, atol=1e-1, rtol=1e-1), err_bf16

    print("KERNEL_OK")
</pallas_src>

<mosaic_0001>
module attributes {stable_mosaic.version = 11 : i64} {
  func.func @bert_layer_kernel(%arg0: i32, %arg1: memref<1x8x32xf32, #tpu.memory_space<vmem>>, %arg2: memref<1x1x8xf32, #tpu.memory_space<vmem>>, %arg3: memref<32x96xf32, #tpu.memory_space<vmem>>, %arg4: memref<1x96xf32, #tpu.memory_space<vmem>>, %arg5: memref<32x32xf32, #tpu.memory_space<vmem>>, %arg6: memref<32x64xf32, #tpu.memory_space<vmem>>, %arg7: memref<1x64xf32, #tpu.memory_space<vmem>>, %arg8: memref<64x32xf32, #tpu.memory_space<vmem>>, %arg9: memref<8x32xf32, #tpu.memory_space<vmem>>, %arg10: memref<1x8x32xf32, #tpu.memory_space<vmem>>) attributes {dimension_semantics = [#tpu.dimension_semantics<parallel>], iteration_bounds = array<i64: 2>, scalar_prefetch = 0 : i64, scratch_operands = 0 : i64, tpu.core_type = #tpu.core_type<tc>, window_params = [{transform_indices = @transform_0, window_bounds = array<i64: 1, 8, 32>}, {transform_indices = @transform_1, window_bounds = array<i64: 1, 1, 8>}, {pipeline_mode = #tpu.pipeline_mode<synchronous>, transform_indices = @transform_2, window_bounds = array<i64: 32, 96>}, {pipeline_mode = #tpu.pipeline_mode<synchronous>, transform_indices = @transform_3, window_bounds = array<i64: 1, 96>}, {pipeline_mode = #tpu.pipeline_mode<synchronous>, transform_indices = @transform_4, window_bounds = array<i64: 32, 32>}, {pipeline_mode = #tpu.pipeline_mode<synchronous>, transform_indices = @transform_5, window_bounds = array<i64: 32, 64>}, {pipeline_mode = #tpu.pipeline_mode<synchronous>, transform_indices = @transform_6, window_bounds = array<i64: 1, 64>}, {pipeline_mode = #tpu.pipeline_mode<synchronous>, transform_indices = @transform_7, window_bounds = array<i64: 64, 32>}, {pipeline_mode = #tpu.pipeline_mode<synchronous>, transform_indices = @transform_8, window_bounds = array<i64: 8, 32>}, {transform_indices = @transform_9, window_bounds = array<i64: 1, 8, 32>}]} {
    %c0 = arith.constant 0 : index
    %c0_0 = arith.constant 0 : index
    %c0_1 = arith.constant 0 : index
    %0 = vector.load %arg1[%c0, %c0_0, %c0_1] : memref<1x8x32xf32, #tpu.memory_space<vmem>>, vector<1x8x32xf32>
    %1 = vector.shape_cast %0 : vector<1x8x32xf32> to vector<8x32xf32>
    %c0_2 = arith.constant 0 : index
    %c0_3 = arith.constant 0 : index
    %c0_4 = arith.constant 0 : index
    %2 = vector.load %arg2[%c0_2, %c0_3, %c0_4] : memref<1x1x8xf32, #tpu.memory_space<vmem>>, vector<1x1x8xf32>
    %3 = vector.shape_cast %2 : vector<1x1x8xf32> to vector<1x8xf32>
    %c0_5 = arith.constant 0 : index
    %c0_6 = arith.constant 0 : index
    %4 = vector.load %arg3[%c0_5, %c0_6] : memref<32x96xf32, #tpu.memory_space<vmem>>, vector<32x96xf32>
    %cst = arith.constant dense<0.000000e+00> : vector<8x96xf32>
    %5 = tpu.matmul %1, %4, %cst {dimension_numbers = #tpu.dot_dimension_numbers<[1], [0], [0], [1], [0, 0, 1, 1], [], []>} : vector<8x32xf32>, vector<32x96xf32>, vector<8x96xf32> -> vector<8x96xf32>
    %c0_7 = arith.constant 0 : index
    %c0_8 = arith.constant 0 : index
    %6 = vector.load %arg4[%c0_7, %c0_8] : memref<1x96xf32, #tpu.memory_space<vmem>>, vector<1x96xf32>
    %7 = vector.broadcast %6 : vector<1x96xf32> to vector<8x96xf32>
    %8 = arith.addf %5, %7 : vector<8x96xf32>
    %9 = vector.extract_strided_slice %8 {offsets = [0, 0], sizes = [8, 32], strides = [1, 1]} : vector<8x96xf32> to vector<8x32xf32>
    %10 = vector.extract_strided_slice %8 {offsets = [0, 32], sizes = [8, 32], strides = [1, 1]} : vector<8x96xf32> to vector<8x32xf32>
    %11 = vector.extract_strided_slice %8 {offsets = [0, 64], sizes = [8, 32], strides = [1, 1]} : vector<8x96xf32> to vector<8x32xf32>
    %12 = tpu.transpose %10, [1, 0] : vector<8x32xf32> -> vector<32x8xf32>
    %13 = vector.extract_strided_slice %9 {offsets = [0, 0], sizes = [8, 8], strides = [1, 1]} : vector<8x32xf32> to vector<8x8xf32>
    %14 = vector.extract_strided_slice %12 {offsets = [0, 0], sizes = [8, 8], strides = [1, 1]} : vector<32x8xf32> to vector<8x8xf32>
    %cst_9 = arith.constant dense<0.000000e+00> : vector<8x8xf32>
    %15 = tpu.matmul %13, %14, %cst_9 {dimension_numbers = #tpu.dot_dimension_numbers<[1], [0], [0], [1], [0, 0, 1, 1], [], []>} : vector<8x8xf32>, vector<8x8xf32>, vector<8x8xf32> -> vector<8x8xf32>
    %16 = vector.broadcast %3 : vector<1x8xf32> to vector<8x8xf32>
    %17 = arith.addf %15, %16 : vector<8x8xf32>
    %cst_10 = arith.constant dense<0xFF800000> : vector<8xf32>
    %18 = vector.multi_reduction <maximumf>, %17, %cst_10 [1] : vector<8x8xf32> to vector<8xf32>
    %19 = vector.shape_cast %18 : vector<8xf32> to vector<8x1xf32>
    %20 = vector.broadcast %19 : vector<8x1xf32> to vector<8x8xf32>
    %21 = arith.subf %17, %20 : vector<8x8xf32>
    %22 = math.exp %21 : vector<8x8xf32>
    %cst_11 = arith.constant dense<0.000000e+00> : vector<8xf32>
    %23 = vector.multi_reduction <add>, %22, %cst_11 [1] : vector<8x8xf32> to vector<8xf32>
    %24 = vector.shape_cast %23 : vector<8xf32> to vector<8x1xf32>
    %25 = tpu.reciprocal %24 : vector<8x1xf32> -> vector<8x1xf32>
    %26 = vector.broadcast %25 : vector<8x1xf32> to vector<8x8xf32>
    %27 = arith.mulf %22, %26 : vector<8x8xf32>
    %28 = vector.extract_strided_slice %11 {offsets = [0, 0], sizes = [8, 8], strides = [1, 1]} : vector<8x32xf32> to vector<8x8xf32>
    %cst_12 = arith.constant dense<0.000000e+00> : vector<8x8xf32>
    %29 = tpu.matmul %27, %28, %cst_12 {dimension_numbers = #tpu.dot_dimension_numbers<[1], [0], [0], [1], [0, 0, 1, 1], [], []>} : vector<8x8xf32>, vector<8x8xf32>, vector<8x8xf32> -> vector<8x8xf32>
    %30 = vector.extract_strided_slice %9 {offsets = [0, 8], sizes = [8, 8], strides = [1, 1]} : vector<8x32xf32> to vector<8x8xf32>
    %31 = vector.extract_strided_slice %12 {offsets = [8, 0], sizes = [8, 8], strides = [1, 1]} : vector<32x8xf32> to vector<8x8xf32>
    %cst_13 = arith.constant dense<0.000000e+00> : vector<8x8xf32>
    %32 = tpu.matmul %30, %31, %cst_13 {dimension_numbers = #tpu.dot_dimension_numbers<[1], [0], [0], [1], [0, 0, 1, 1], [], []>} : vector<8x8xf32>, vector<8x8xf32>, vector<8x8xf32> -> vector<8x8xf32>
    %33 = vector.broadcast %3 : vector<1x8xf32> to vector<8x8xf32>
    %34 = arith.addf %32, %33 : vector<8x8xf32>
    %cst_14 = arith.constant dense<0xFF800000> : vector<8xf32>
    %35 = vector.multi_reduction <maximumf>, %34, %cst_14 [1] : vector<8x8xf32> to vector<8xf32>
    %36 = vector.shape_cast %35 : vector<8xf32> to vector<8x1xf32>
    %37 = vector.broadcast %36 : vector<8x1xf32> to vector<8x8xf32>
    %38 = arith.subf %34, %37 : vector<8x8xf32>
    %39 = math.exp %38 : vector<8x8xf32>
    %cst_15 = arith.constant dense<0.000000e+00> : vector<8xf32>
    %40 = vector.multi_reduction <add>, %39, %cst_15 [1] : vector<8x8xf32> to vector<8xf32>
    %41 = vector.shape_cast %40 : vector<8xf32> to vector<8x1xf32>
    %42 = tpu.reciprocal %41 : vector<8x1xf32> -> vector<8x1xf32>
    %43 = vector.broadcast %42 : vector<8x1xf32> to vector<8x8xf32>
    %44 = arith.mulf %39, %43 : vector<8x8xf32>
    %45 = vector.extract_strided_slice %11 {offsets = [0, 8], sizes = [8, 8], strides = [1, 1]} : vector<8x32xf32> to vector<8x8xf32>
    %cst_16 = arith.constant dense<0.000000e+00> : vector<8x8xf32>
    %46 = tpu.matmul %44, %45, %cst_16 {dimension_numbers = #tpu.dot_dimension_numbers<[1], [0], [0], [1], [0, 0, 1, 1], [], []>} : vector<8x8xf32>, vector<8x8xf32>, vector<8x8xf32> -> vector<8x8xf32>
    %47 = vector.extract_strided_slice %9 {offsets = [0, 16], sizes = [8, 8], strides = [1, 1]} : vector<8x32xf32> to vector<8x8xf32>
    %48 = vector.extract_strided_slice %12 {offsets = [16, 0], sizes = [8, 8], strides = [1, 1]} : vector<32x8xf32> to vector<8x8xf32>
    %cst_17 = arith.constant dense<0.000000e+00> : vector<8x8xf32>
    %49 = tpu.matmul %47, %48, %cst_17 {dimension_numbers = #tpu.dot_dimension_numbers<[1], [0], [0], [1], [0, 0, 1, 1], [], []>} : vector<8x8xf32>, vector<8x8xf32>, vector<8x8xf32> -> vector<8x8xf32>
    %50 = vector.broadcast %3 : vector<1x8xf32> to vector<8x8xf32>
    %51 = arith.addf %49, %50 : vector<8x8xf32>
    %cst_18 = arith.constant dense<0xFF800000> : vector<8xf32>
    %52 = vector.multi_reduction <maximumf>, %51, %cst_18 [1] : vector<8x8xf32> to vector<8xf32>
    %53 = vector.shape_cast %52 : vector<8xf32> to vector<8x1xf32>
    %54 = vector.broadcast %53 : vector<8x1xf32> to vector<8x8xf32>
    %55 = arith.subf %51, %54 : vector<8x8xf32>
    %56 = math.exp %55 : vector<8x8xf32>
    %cst_19 = arith.constant dense<0.000000e+00> : vector<8xf32>
    %57 = vector.multi_reduction <add>, %56, %cst_19 [1] : vector<8x8xf32> to vector<8xf32>
    %58 = vector.shape_cast %57 : vector<8xf32> to vector<8x1xf32>
    %59 = tpu.reciprocal %58 : vector<8x1xf32> -> vector<8x1xf32>
    %60 = vector.broadcast %59 : vector<8x1xf32> to vector<8x8xf32>
    %61 = arith.mulf %56, %60 : vector<8x8xf32>
    %62 = vector.extract_strided_slice %11 {offsets = [0, 16], sizes = [8, 8], strides = [1, 1]} : vector<8x32xf32> to vector<8x8xf32>
    %cst_20 = arith.constant dense<0.000000e+00> : vector<8x8xf32>
    %63 = tpu.matmul %61, %62, %cst_20 {dimension_numbers = #tpu.dot_dimension_numbers<[1], [0], [0], [1], [0, 0, 1, 1], [], []>} : vector<8x8xf32>, vector<8x8xf32>, vector<8x8xf32> -> vector<8x8xf32>
    %64 = vector.extract_strided_slice %9 {offsets = [0, 24], sizes = [8, 8], strides = [1, 1]} : vector<8x32xf32> to vector<8x8xf32>
    %65 = vector.extract_strided_slice %12 {offsets = [24, 0], sizes = [8, 8], strides = [1, 1]} : vector<32x8xf32> to vector<8x8xf32>
    %cst_21 = arith.constant dense<0.000000e+00> : vector<8x8xf32>
    %66 = tpu.matmul %64, %65, %cst_21 {dimension_numbers = #tpu.dot_dimension_numbers<[1], [0], [0], [1], [0, 0, 1, 1], [], []>} : vector<8x8xf32>, vector<8x8xf32>, vector<8x8xf32> -> vector<8x8xf32>
    %67 = vector.broadcast %3 : vector<1x8xf32> to vector<8x8xf32>
    %68 = arith.addf %66, %67 : vector<8x8xf32>
    %cst_22 = arith.constant dense<0xFF800000> : vector<8xf32>
    %69 = vector.multi_reduction <maximumf>, %68, %cst_22 [1] : vector<8x8xf32> to vector<8xf32>
    %70 = vector.shape_cast %69 : vector<8xf32> to vector<8x1xf32>
    %71 = vector.broadcast %70 : vector<8x1xf32> to vector<8x8xf32>
    %72 = arith.subf %68, %71 : vector<8x8xf32>
    %73 = math.exp %72 : vector<8x8xf32>
    %cst_23 = arith.constant dense<0.000000e+00> : vector<8xf32>
    %74 = vector.multi_reduction <add>, %73, %cst_23 [1] : vector<8x8xf32> to vector<8xf32>
    %75 = vector.shape_cast %74 : vector<8xf32> to vector<8x1xf32>
    %76 = tpu.reciprocal %75 : vector<8x1xf32> -> vector<8x1xf32>
    %77 = vector.broadcast %76 : vector<8x1xf32> to vector<8x8xf32>
    %78 = arith.mulf %73, %77 : vector<8x8xf32>
    %79 = vector.extract_strided_slice %11 {offsets = [0, 24], sizes = [8, 8], strides = [1, 1]} : vector<8x32xf32> to vector<8x8xf32>
    %cst_24 = arith.constant dense<0.000000e+00> : vector<8x8xf32>
    %80 = tpu.matmul %78, %79, %cst_24 {dimension_numbers = #tpu.dot_dimension_numbers<[1], [0], [0], [1], [0, 0, 1, 1], [], []>} : vector<8x8xf32>, vector<8x8xf32>, vector<8x8xf32> -> vector<8x8xf32>
    %81 = tpu.concatenate %29, %46, %63, %80 in 1 : vector<8x8xf32>, vector<8x8xf32>, vector<8x8xf32>, vector<8x8xf32> -> vector<8x32xf32>
    %c0_25 = arith.constant 0 : index
    %c0_26 = arith.constant 0 : index
    %82 = vector.load %arg5[%c0_25, %c0_26] : memref<32x32xf32, #tpu.memory_space<vmem>>, vector<32x32xf32>
    %cst_27 = arith.constant dense<0.000000e+00> : vector<8x32xf32>
    %83 = tpu.matmul %81, %82, %cst_27 {dimension_numbers = #tpu.dot_dimension_numbers<[1], [0], [0], [1], [0, 0, 1, 1], [], []>} : vector<8x32xf32>, vector<32x32xf32>, vector<8x32xf32> -> vector<8x32xf32>
    %c0_28 = arith.constant 0 : index
    %c0_29 = arith.constant 0 : index
    %84 = vector.load %arg9[%c0_28, %c0_29] : memref<8x32xf32, #tpu.memory_space<vmem>>, vector<1x32xf32>
    %85 = vector.broadcast %84 : vector<1x32xf32> to vector<8x32xf32>
    %86 = arith.addf %83, %85 : vector<8x32xf32>
    %87 = arith.addf %86, %1 : vector<8x32xf32>
    %c2 = arith.constant 2 : index
    %c0_30 = arith.constant 0 : index
    %88 = vector.load %arg9[%c2, %c0_30] : memref<8x32xf32, #tpu.memory_space<vmem>>, vector<1x32xf32>
    %c3 = arith.constant 3 : index
    %c0_31 = arith.constant 0 : index
    %89 = vector.load %arg9[%c3, %c0_31] : memref<8x32xf32, #tpu.memory_space<vmem>>, vector<1x32xf32>
    %cst_32 = arith.constant dense<0.000000e+00> : vector<8xf32>
    %90 = vector.multi_reduction <add>, %87, %cst_32 [1] : vector<8x32xf32> to vector<8xf32>
    %91 = vector.shape_cast %90 : vector<8xf32> to vector<8x1xf32>
    %cst_33 = arith.constant 3.200000e+01 : f32
    %92 = vector.broadcast %cst_33 : f32 to vector<8x1xf32>
    %93 = arith.divf %91, %92 : vector<8x1xf32>
    %94 = vector.broadcast %93 : vector<8x1xf32> to vector<8x32xf32>
    %95 = arith.subf %87, %94 : vector<8x32xf32>
    %96 = arith.mulf %95, %95 : vector<8x32xf32>
    %cst_34 = arith.constant dense<0.000000e+00> : vector<8xf32>
    %97 = vector.multi_reduction <add>, %96, %cst_34 [1] : vector<8x32xf32> to vector<8xf32>
    %98 = vector.shape_cast %97 : vector<8xf32> to vector<8x1xf32>
    %cst_35 = arith.constant 3.200000e+01 : f32
    %99 = vector.broadcast %cst_35 : f32 to vector<8x1xf32>
    %100 = arith.divf %98, %99 : vector<8x1xf32>
    %cst_36 = arith.constant 9.99999996E-13 : f32
    %101 = vector.broadcast %cst_36 : f32 to vector<8x1xf32>
    %102 = arith.addf %100, %101 : vector<8x1xf32>
    %103 = math.rsqrt %102 : vector<8x1xf32>
    %104 = vector.broadcast %93 : vector<8x1xf32> to vector<8x32xf32>
    %105 = arith.subf %87, %104 : vector<8x32xf32>
    %106 = vector.broadcast %103 : vector<8x1xf32> to vector<8x32xf32>
    %107 = arith.mulf %105, %106 : vector<8x32xf32>
    %108 = vector.broadcast %88 : vector<1x32xf32> to vector<8x32xf32>
    %109 = arith.mulf %107, %108 : vector<8x32xf32>
    %110 = vector.broadcast %89 : vector<1x32xf32> to vector<8x32xf32>
    %111 = arith.addf %109, %110 : vector<8x32xf32>
    %c0_37 = arith.constant 0 : index
    %c0_38 = arith.constant 0 : index
    %112 = vector.load %arg6[%c0_37, %c0_38] : memref<32x64xf32, #tpu.memory_space<vmem>>, vector<32x64xf32>
    %cst_39 = arith.constant dense<0.000000e+00> : vector<8x64xf32>
    %113 = tpu.matmul %111, %112, %cst_39 {dimension_numbers = #tpu.dot_dimension_numbers<[1], [0], [0], [1], [0, 0, 1, 1], [], []>} : vector<8x32xf32>, vector<32x64xf32>, vector<8x64xf32> -> vector<8x64xf32>
    %c0_40 = arith.constant 0 : index
    %c0_41 = arith.constant 0 : index
    %114 = vector.load %arg7[%c0_40, %c0_41] : memref<1x64xf32, #tpu.memory_space<vmem>>, vector<1x64xf32>
    %115 = vector.broadcast %114 : vector<1x64xf32> to vector<8x64xf32>
    %116 = arith.addf %113, %115 : vector<8x64xf32>
    %cst_42 = arith.constant 5.000000e-01 : f32
    %117 = vector.broadcast %cst_42 : f32 to vector<8x64xf32>
    %118 = arith.mulf %117, %116 : vector<8x64xf32>
    %cst_43 = arith.constant 0.707106769 : f32
    %119 = vector.broadcast %cst_43 : f32 to vector<8x64xf32>
    %120 = arith.mulf %116, %119 : vector<8x64xf32>
    %121 = math.erf %120 : vector<8x64xf32>
    %cst_44 = arith.constant 1.000000e+00 : f32
    %122 = vector.broadcast %cst_44 : f32 to vector<8x64xf32>
    %123 = arith.addf %122, %121 : vector<8x64xf32>
    %124 = arith.mulf %118, %123 : vector<8x64xf32>
    %c0_45 = arith.constant 0 : index
    %c0_46 = arith.constant 0 : index
    %125 = vector.load %arg8[%c0_45, %c0_46] : memref<64x32xf32, #tpu.memory_space<vmem>>, vector<64x32xf32>
    %cst_47 = arith.constant dense<0.000000e+00> : vector<8x32xf32>
    %126 = tpu.matmul %124, %125, %cst_47 {dimension_numbers = #tpu.dot_dimension_numbers<[1], [0], [0], [1], [0, 0, 1, 1], [], []>} : vector<8x64xf32>, vector<64x32xf32>, vector<8x32xf32> -> vector<8x32xf32>
    %c1 = arith.constant 1 : index
    %c0_48 = arith.constant 0 : index
    %127 = vector.load %arg9[%c1, %c0_48] : memref<8x32xf32, #tpu.memory_space<vmem>>, vector<1x32xf32>
    %128 = vector.broadcast %127 : vector<1x32xf32> to vector<8x32xf32>
    %129 = arith.addf %126, %128 : vector<8x32xf32>
    %130 = arith.addf %129, %111 : vector<8x32xf32>
    %c4 = arith.constant 4 : index
    %c0_49 = arith.constant 0 : index
    %131 = vector.load %arg9[%c4, %c0_49] : memref<8x32xf32, #tpu.memory_space<vmem>>, vector<1x32xf32>
    %c5 = arith.constant 5 : index
    %c0_50 = arith.constant 0 : index
    %132 = vector.load %arg9[%c5, %c0_50] : memref<8x32xf32, #tpu.memory_space<vmem>>, vector<1x32xf32>
    %cst_51 = arith.constant dense<0.000000e+00> : vector<8xf32>
    %133 = vector.multi_reduction <add>, %130, %cst_51 [1] : vector<8x32xf32> to vector<8xf32>
    %134 = vector.shape_cast %133 : vector<8xf32> to vector<8x1xf32>
    %cst_52 = arith.constant 3.200000e+01 : f32
    %135 = vector.broadcast %cst_52 : f32 to vector<8x1xf32>
    %136 = arith.divf %134, %135 : vector<8x1xf32>
    %137 = vector.broadcast %136 : vector<8x1xf32> to vector<8x32xf32>
    %138 = arith.subf %130, %137 : vector<8x32xf32>
    %139 = arith.mulf %138, %138 : vector<8x32xf32>
    %cst_53 = arith.constant dense<0.000000e+00> : vector<8xf32>
    %140 = vector.multi_reduction <add>, %139, %cst_53 [1] : vector<8x32xf32> to vector<8xf32>
    %141 = vector.shape_cast %140 : vector<8xf32> to vector<8x1xf32>
    %cst_54 = arith.constant 3.200000e+01 : f32
    %142 = vector.broadcast %cst_54 : f32 to vector<8x1xf32>
    %143 = arith.divf %141, %142 : vector<8x1xf32>
    %cst_55 = arith.constant 9.99999996E-13 : f32
    %144 = vector.broadcast %cst_55 : f32 to vector<8x1xf32>
    %145 = arith.addf %143, %144 : vector<8x1xf32>
    %146 = math.rsqrt %145 : vector<8x1xf32>
    %147 = vector.broadcast %136 : vector<8x1xf32> to vector<8x32xf32>
    %148 = arith.subf %130, %147 : vector<8x32xf32>
    %149 = vector.broadcast %146 : vector<8x1xf32> to vector<8x32xf32>
    %150 = arith.mulf %148, %149 : vector<8x32xf32>
    %151 = vector.broadcast %131 : vector<1x32xf32> to vector<8x32xf32>
    %152 = arith.mulf %150, %151 : vector<8x32xf32>
    %153 = vector.broadcast %132 : vector<1x32xf32> to vector<8x32xf32>
    %154 = arith.addf %152, %153 : vector<8x32xf32>
    %c0_56 = arith.constant 0 : index
    %c0_57 = arith.constant 0 : index
    %c0_58 = arith.constant 0 : index
    %155 = vector.load %arg10[%c0_56, %c0_57, %c0_58] : memref<1x8x32xf32, #tpu.memory_space<vmem>>, vector<1x8x32xf32>
    %156 = vector.shape_cast %155 : vector<1x8x32xf32> to vector<8x32xf32>
    %157 = vector.shape_cast %154 : vector<8x32xf32> to vector<1x8x32xf32>
    tpu.vector_store %arg10[%c0_56, %c0_57, %c0_58], %157 {strides = array<i32>} : memref<1x8x32xf32, #tpu.memory_space<vmem>>, vector<1x8x32xf32>,
    return
  }
  func.func @transform_0(%arg0: i32) -> (i32, i32, i32) {
    %c0_i32 = arith.constant 0 : i32
    %c0_i32_0 = arith.constant 0 : i32
    %c0_i32_1 = arith.constant 0 : i32
    return %arg0, %c0_i32, %c0_i32_0 : i32, i32, i32
  }
  func.func @transform_1(%arg0: i32) -> (i32, i32, i32) {
    %c0_i32 = arith.constant 0 : i32
    %c0_i32_0 = arith.constant 0 : i32
    %c0_i32_1 = arith.constant 0 : i32
    return %arg0, %c0_i32, %c0_i32_0 : i32, i32, i32
  }
  func.func @transform_2(%arg0: i32) -> (i32, i32) {
    %c0_i32 = arith.constant 0 : i32
    %c0_i32_0 = arith.constant 0 : i32
    %c0_i32_1 = arith.constant 0 : i32
    return %c0_i32, %c0_i32_0 : i32, i32
  }
  func.func @transform_3(%arg0: i32) -> (i32, i32) {
    %c0_i32 = arith.constant 0 : i32
    %c0_i32_0 = arith.constant 0 : i32
    %c0_i32_1 = arith.constant 0 : i32
    return %c0_i32, %c0_i32_0 : i32, i32
  }
  func.func @transform_4(%arg0: i32) -> (i32, i32) {
    %c0_i32 = arith.constant 0 : i32
    %c0_i32_0 = arith.constant 0 : i32
    %c0_i32_1 = arith.constant 0 : i32
    return %c0_i32, %c0_i32_0 : i32, i32
  }
  func.func @transform_5(%arg0: i32) -> (i32, i32) {
    %c0_i32 = arith.constant 0 : i32
    %c0_i32_0 = arith.constant 0 : i32
    %c0_i32_1 = arith.constant 0 : i32
    return %c0_i32, %c0_i32_0 : i32, i32
  }
  func.func @transform_6(%arg0: i32) -> (i32, i32) {
    %c0_i32 = arith.constant 0 : i32
    %c0_i32_0 = arith.constant 0 : i32
    %c0_i32_1 = arith.constant 0 : i32
    return %c0_i32, %c0_i32_0 : i32, i32
  }
  func.func @transform_7(%arg0: i32) -> (i32, i32) {
    %c0_i32 = arith.constant 0 : i32
    %c0_i32_0 = arith.constant 0 : i32
    %c0_i32_1 = arith.constant 0 : i32
    return %c0_i32, %c0_i32_0 : i32, i32
  }
  func.func @transform_8(%arg0: i32) -> (i32, i32) {
    %c0_i32 = arith.constant 0 : i32
    %c0_i32_0 = arith.constant 0 : i32
    %c0_i32_1 = arith.constant 0 : i32
    return %c0_i32, %c0_i32_0 : i32, i32
  }
  func.func @transform_9(%arg0: i32) -> (i32, i32, i32) {
    %c0_i32 = arith.constant 0 : i32
    %c0_i32_0 = arith.constant 0 : i32
    %c0_i32_1 = arith.constant 0 : i32
    return %arg0, %c0_i32, %c0_i32_0 : i32, i32, i32
  }
}

</mosaic_0001>

<bundles_post_ra>
// kernel: tpu_custom_call.1
= control target key start
LH: loop header
LB: loop body
LE: loop exit
PB: predicated region body
PF: predicated region fallthrough
CT: control target
= control target key end

     0   :  { %s2400_s0 = inlined_call_operand.hbm [shape: f32[2,8,32], index: 0, kind: input, shape index: {}]   ;;  %s2401_s1 = inlined_call_operand.hbm [shape: f32[2,1,8], index: 1, kind: input, shape index: {}]   ;;  %s2402_s2 = inlined_call_operand.vmem [shape: f32[32,96], index: 2, kind: input, shape index: {}]   ;;  %s2403_s3 = inlined_call_operand.vmem [shape: f32[1,96], index: 3, kind: input, shape index: {}]   ;;  %s2404_s4 = inlined_call_operand.vmem [shape: f32[32,32], index: 4, kind: input, shape index: {}]   ;;  %s2405_s5 = inlined_call_operand.vmem [shape: f32[32,64], index: 5, kind: input, shape index: {}]   ;;  %s2406_s6 = inlined_call_operand.vmem [shape: f32[1,64], index: 6, kind: input, shape index: {}]   ;;  %s2407_s7 = inlined_call_operand.vmem [shape: f32[64,32], index: 7, kind: input, shape index: {}]   ;;  %s2408_s8 = inlined_call_operand.vmem [shape: f32[8,32], index: 8, kind: input, shape index: {}]   ;;  %s2409_s9 = inlined_call_operand.hbm [shape: f32[2,8,32], index: 9, kind: output, shape index: {}]  }
   0x1   :  { %2413 = sst [smem:[#allocation13_spill]] %s2400_s0 }
   0x2   :  { %14 = vsyncpa [#allocation3], 0 }
   0x3   :  { %16 = vsyncpa [#allocation3 + $0x1], 0 }
   0x4   :  { %17 = vsyncpa [#allocation6], 0 }
   0x5   :  { %19 = vsyncpa [#allocation6 + $0x1], 0 }
   0x6   :  { %20 = vsyncpa [#allocation4], 0 }
   0x7   :  { %22 = vsyncpa [#allocation4 + $0x1], 0  ;;  %s2022_s30 = smov 0   ;;  %s2024_s10 = smov 0  }
   0x8   :  { %s2026_s11 = smov 0   ;;  %s2028_s12 = smov 0  }
   0x9 LB: > { %2414 = sst [smem:[#allocation11_spill]] %s1947_s11  ;;  %s2043_s13 = sadd.s32 4294967295, %s1951_s12   ;;  %s1951_s12 = sphi %s2028_s12, %s2434_s12   ;;  %s1947_s11 = sphi %s2026_s11, %s2431_s11   ;;  %s1943_s10 = sphi %s2024_s10, %s2433_s10   ;;  %s1939_s30 = sphi %s2022_s30, %s2432_s30  }
   0xa   : > { %s1568_s14 = sadd.s32 4294967294, %s1951_s12   ;;  %s2047_s15 = sadd.s32 1, %s1951_s12  }
   0xb   : > { %s35_s16 = sadd.s32 1, %s1947_s11  ;;  %s32_s17 = ssub.s32 %s1951_s12, %s2047_s15 }
   0xc   : > { %p42_p0 = scmp.ne.s32.totalorder %s1947_s11, %s1943_s10  ;;  %p33_p1 = scmp.eq.s32.totalorder %s32_s17, 0 }
   0xd   : > { %p43_p2 = scmp.eq.s32.totalorder %s1951_s12, 0  ;;  %p48_p3 = scmp.ne.s32.totalorder %s1943_s10, %s1939_s30 }
   0xe   : > { %p49_p4 = scmp.eq.s32.totalorder %s2043_s13, 0  ;;  %p245_p7 = scmp.eq.s32.totalorder %s2043_s13, 1 }
   0xf   : > { %s2059_s18 = scalar_select %p33_p1, %s1947_s11, %s35_s16  }
  0x10   : > { %p2061_p5 = por %p43_p2, %p42_p0  ;;  %p2065_p6 = por %p49_p4, %p48_p3 }
  0x11   : > { %2415 = sst [smem:[#allocation12_spill]] %s2059_s18  ;;  %p251_p8 = scmp.eq.s32.totalorder %s1568_s14, 1 }
  0x12   : > { %s2417_s20 = scalar_select %p2065_p6, 1, 0 }
  0x13   : > { %p1755_p10 = scmp.lt.s32.totalorder %s1951_s12, 2  ;;  %p2072_p11 = por %p245_p7, %p42_p0 }
  0x14   : > { %p2076_p12 = por %p251_p8, %p48_p3  ;;  %s2081_s23 = sand.u32 1, %s1947_s11  }
  0x15   : > { %s2418_s21 = scalar_select %p2072_p11, 1, 0 }
  0x16   : > { %s2419_s22 = scalar_select %p2076_p12, 1, 0 }
  0x17   : > { %s1572_s24 = sshll.u32 %s1951_s12, 7  ;;  %s1571_s25 = sshll.u32 %s2081_s23, 3 }
  0x18   : > { %s2420_s0 = sld [smem:[#allocation13_spill]]  ;;  %s296_s29 = scalar_lea.vmem [#allocation2], %s1571_s25 }
  0x19   : > { %s303_s14 = sshll.u32 %s296_s29, 4  ;;  %p2092_p13 = pnand %p1755_p10, %p2061_p5  ;;  %s2096_s14 = int_to_ptr.vmem [resolvable:$true] %s303_s14 }
  0x1a   : > { %s293_s17 = scalar_lea.sflag [#allocation3], %s2081_s23 }
  0x1b   : > { %p1829_p3 = pneg %p2092_p13 }
  0x1e   : > { %s2088_s28 = scalar_lea.hbm %s2420_s0, %s1572_s24  ;;  %s1832_s25 = scalar_lea.hbm %s2420_s0, 256 }
  0x1f   : > { %s1827_s26 = scalar_lea.hbm %s2088_s28, 128  ;;  %p1833_p5 = scmp.lt.s32.totalorder %s2088_s28, %s2420_s0 }
  0x20   : > { %p1828_p2 = scmp.ne.s32.totalorder %s2088_s28, %s1827_s26  ;;  %p1834_p8 = scmp.lt.s32.totalorder %s1832_s25, %s1827_s26 }
  0x22   : > { %p1830_p4 = pnand %p1829_p3, %p1828_p2  ;;  %p1835_p10 = por %p1834_p8, %p1833_p5 }
  0x24   : > { %p1831_p7 = pneg %p1830_p4 }
  0x26   : > { %p1836_p9 = pnand %p1835_p10, %p1831_p7 }
  0x28   : > { %1839 = shalt.err (!%p1836_p9)
}
  0x29   : > { %s1840_s18 = scalar_lea.vmem %s2096_s14, 128  ;;  %s1953_s19 = smov [#allocation2]  }
  0x2a   : > { %p1841_p0 = scmp.ne.s32.totalorder %s2096_s14, %s1840_s18  ;;  %s1845_s24 = sshll.u32 %s1953_s19, 4  ;;  %s1846_s24 = int_to_ptr.vmem [resolvable:$false] %s1845_s24 }
  0x2b   : > { %s1847_s11 = scalar_lea.vmem %s1846_s24, 256  ;;  %p1848_p1 = scmp.lt.s32.totalorder %s2096_s14, %s1846_s24 }
  0x2c   : > { %p1843_p2 = pnand %p1841_p0, %p1829_p3  ;;  %p1849_p12 = scmp.lt.s32.totalorder %s1847_s11, %s1840_s18 }
  0x2e   : > { %p1844_p4 = pneg %p1843_p2  ;;  %p1850_p11 = por %p1849_p12, %p1848_p1 }
  0x30   : > { %p1851_p5 = pnand %p1850_p11, %p1844_p4 }
  0x32   : > { %1854 = shalt.err (!%p1851_p5)
}
  0x33   : > { %1747 = dma.hbm_to_vmem [thread:$0]  (!%p2092_p13), %s2088_s28, 128, %s2096_s14, %s293_s17  }
  0x34   : > { %p2422_p9 = scmp.lt.s32.totalorder %s1951_s12, 3  ;;  %p2423_p0 = scmp.ge.s32.totalorder %s1951_s12, 1 }
  0x35   : > { %s1573_s11 = sshll.u32 %s1951_s12, 4  ;;  %s313_s29 = scalar_lea.vmem [#allocation5], %s2081_s23 }
  0x36   : > { %p2129_p7 = pnand %p2423_p0, %p2422_p9  ;;  %s2137_s27 = scalar_lea.hbm %s2401_s1, %s1573_s11 }
  0x37   : > { %s320_s19 = sshll.u32 %s313_s29, 4  ;;  %s311_s24 = scalar_lea.sflag [#allocation6], %s2081_s23  ;;  %s321_s19 = int_to_ptr.vmem [resolvable:$true] %s320_s19 }
  0x38   : > { %s2424_s26 = scalar_select %p2129_p7, 1, 0 }
  0x39   : > { %s1855_s28 = scalar_lea.hbm %s2137_s27, 16  ;;  %s1860_s0 = scalar_lea.hbm %s2401_s1, 32 }
  0x3a   : > { %p1856_p11 = scmp.ne.s32.totalorder %s2137_s27, %s1855_s28  ;;  %p1861_p8 = scmp.lt.s32.totalorder %s2137_s27, %s2401_s1 }
  0x3b   : > { %p1862_p10 = scmp.lt.s32.totalorder %s1860_s0, %s1855_s28 }
  0x3c   : > { %p1858_p12 = pnand %p1856_p11, %p1829_p3 }
  0x3d   : > { %p1863_p2 = por %p1862_p10, %p1861_p8 }
  0x3e   : > { %p1859_p1 = pneg %p1858_p12 }
  0x40   : > { %p1864_p4 = pnand %p1863_p2, %p1859_p1 }
  0x42   : > { %1867 = shalt.err (!%p1864_p4)
}
  0x43   : > { %s1868_s25 = scalar_lea.vmem %s321_s19, 16  ;;  %s1954_s23 = smov [#allocation5]  }
  0x44   : > { %p1869_p5 = scmp.ne.s32.totalorder %s321_s19, %s1868_s25  ;;  %s1873_s29 = sshll.u32 %s1954_s23, 4  ;;  %s1874_s29 = int_to_ptr.vmem [resolvable:$false] %s1873_s29 }
  0x45   : > { %s1875_s14 = scalar_lea.vmem %s1874_s29, 32  ;;  %p1876_p11 = scmp.lt.s32.totalorder %s321_s19, %s1874_s29 }
  0x46   : > { %p1871_p9 = pnand %p1869_p5, %p1829_p3  ;;  %p1877_p12 = scmp.lt.s32.totalorder %s1875_s14, %s1868_s25 }
  0x48   : > { %p1872_p0 = pneg %p1871_p9  ;;  %p1878_p6 = por %p1877_p12, %p1876_p11 }
  0x4a   : > { %p1879_p7 = pnand %p1878_p6, %p1872_p0 }
  0x4c   : > { %1882 = shalt.err (!%p1879_p7)
}
  0x4d   : > { %1750 = dma.hbm_to_vmem [thread:$0]  (!%p2092_p13), %s2137_s27, 16, %s321_s19, %s311_s24  }
  0x4e   : > { %p2425_p1 = scmp.ne.s32.totalorder %s2424_s26, 0 }
  0x4f   : > { %s2162_s0 = sand.u32 (!%p2425_p1), 1, %s1943_s10   ;;  %p2426_p6 = scmp.ne.s32.totalorder (!%p2425_p1), %s2417_s20, 0 }
  0x50   : > { %329 = sbr.rel (%p2425_p1) target bundleno = 2522 (0x9da), region = 56  ;;  %s1575_s28 = sshll.u32 (!%p2425_p1), %s2162_s0, 3 }
  0x51   : > { %s332_s17 = scalar_lea.sflag (!%p2425_p1), [#allocation3], %s2162_s0  ;;  %s335_s18 = scalar_lea.vmem (!%p2425_p1), [#allocation2], %s1575_s28 }
  0x55   : > { %1926 = dma.done.wait (%p2426_p6), %s332_s17, 128  }
  0x56   : > { %1928 = vsyncadd (%p2426_p6), %s332_s17, 4294967168  ;;  %s341_s16 = scalar_lea.sflag [#allocation6], %s2162_s0  ;;  %s343_s26 = scalar_lea.vmem [#allocation5], %s2162_s0 }
  0x57   : > { %1930 = dma.done.wait (%p2426_p6), %s341_s16, 16  }
  0x58   : > { %1932 = vsyncadd (%p2426_p6), %s341_s16, 4294967280  ;;  %v1955_v0 = vmov 0.0   ;;  %vm1956_vm0 = vmmov 0   ;;  %v387_v1 = vld [vmem:[%s2402_s2 + $0x18] sm:$0xff]  ;;  %v386_v2 = vld [vmem:[%s2402_s2 + $0x10] sm:$0xff]  ;;  %vm395_vm1 = vcmask 261120  }
  0x59   : > { %1646 = vmatprep.subr.mxu1 %v1955_v0  ;;  %1654 = vmatprep.mubr.msk.f32.mxu1 %vm1956_vm0, %v1955_v0  ;;  %v385_v3 = vld [vmem:[%s2402_s2 + $0x8] sm:$0xff]  ;;  %v384_v4 = vld [vmem:[%s2402_s2] sm:$0xff]  ;;  %s1958_s16 = smov 96   ;;  %s1959_s27 = smov 80   ;;  %vm478_vm2 = vcmask 64512   ;;  %vm1148_vm3 = vcmask 130048  }
  0x5a   : > { %1667 = vmatprep.subr.mxu0 %v1955_v0  ;;  %1669 = vmatprep.mubr.msk.f32.mxu0 %vm1956_vm0, %v1955_v0  ;;  %v2198_v5 = vld [vmem:[%s335_s18] sm:$0xff]  ;;  %s1957_s18 = smov 120   ;;  %s1960_s19 = smov 88   ;;  %vm1150_vm4 = vcmask 195584   ;;  %vm1363_vm5 = vcmask 523264  }
  0x5b   : > { %1647 = vmatpush3.msra.mxu1 %v387_v1  ;;  %v1577_v6 = vld [vmem:[%s2403_s3] ss:$0 sm:$0xff]  ;;  %s1961_s24 = smov 72   ;;  %s1962_s11 = smov 112  }
  0x5c   : > { %1648 = vmatprep.subr.mxu1 %v1955_v0  ;;  %s1963_s20 = smov 104   ;;  %v1579_v17 = vld [vmem:[%s343_s26] ss:$0 sm:$0xff]  ;;  %s1964_s26 = smov 56  }
  0x5d   : > { %1649 = vmatpush3.msra.mxu1 %v386_v2  ;;  %s1965_s25 = smov 64   ;;  %s1966_s23 = smov 48  }
  0x5e   : > { %1650 = vmatprep.subr.mxu1 %v1955_v0  ;;  %s1967_s29 = smov 40   ;;  %p2427_p3 = scmp.ne.s32.totalorder %s2418_s21, 0 }
  0x5f   : > { %1651 = vmatpush3.msra.mxu1 %v385_v3 }
  0x60   : > { %1652 = vmatprep.subr.mxu1 %v1955_v0 }
  0x61   : > { %1653 = vmatpush3.msra.mxu1 %v384_v4 }
  0x62   : > { %1655 = vmatmul.mubr.msk.f32.vlgmr.msra.gmra.mxu1 %vm395_vm1, %v2198_v5  ;;  %1657 = vmatprep.subr.mxu1 %v1955_v0 }
  0x63   : > { %1659 = vmatprep.mubr.msk.f32.mxu1 %vm1956_vm0, %v1955_v0 }
 0x122   : > { %v465_v7 = vpop.f32.mrf.mxu1 }
 0x123   : > { %v2209_v8 = vadd.f32 %v1577_v6, %v465_v7 }
 0x124   : > { %v1656_v9 = vpop.f32.mrf.mxu1 }
 0x125   : > { %640 = vrot.lane.b32.xlu1 %v2209_v8, %s1957_s18  ;;  %476 = vrot.lane.b32.xlu0 %v2209_v8, %s1958_s16  ;;  %s1968_s18 = smov 8   ;;  %s1465_s16 = scalar_lea.sflag [#allocation4], %s2162_s0 }
 0x129   : > { %807 = vrot.lane.b32.xlu1 %v2209_v8, %s1959_s27  ;;  %642 = vrot.lane.b32.xlu0 %v2209_v8, %s1960_s19  ;;  %s1971_s19 = smov [#allocation7]  }
 0x12d   : > { %972 = vrot.lane.b32.xlu1 %v2209_v8, %s1961_s24  ;;  %805 = vrot.lane.b32.xlu0 %v2209_v8, %s1962_s11 }
 0x131   : > { %970 = vrot.lane.b32.xlu0 %v2209_v8, %s1963_s20 }
 0x197   : > { %v641_v10 = vpop.permute.xlu1 %640  ;;  %v477_v11 = vpop.permute.xlu0 %476 }
 0x198   : > { %1658 = vmatpush3.xpose.msk.msra.mxu1 %vm478_vm2, %v477_v11 }
 0x199   : > { %1662 = vmatprep.subr.mxu1 %v1955_v0 }
 0x19b   : > { %1660 = vmatmul.mubr.msk.f32.vlgmr.msra.gmra.mxu1 %vm478_vm2, %v2209_v8  ;;  %v643_v12 = vpop.permute.xlu0 %642  ;;  %v808_v13 = vpop.permute.xlu1 %807 }
 0x19c   : > { %1668 = vmatpush3.xpose.msk.msra.mxu0 %vm478_vm2, %v643_v12  ;;  %1664 = vmatprep.mubr.msk.f32.mxu1 %vm1956_vm0, %v1955_v0 }
 0x19d   : > { %1677 = vmatprep.subr.mxu0 %v1955_v0 }
 0x19f   : > { %1670 = vmatmul.mubr.msk.f32.vlgmr.msra.gmra.mxu0 %vm478_vm2, %v641_v10  ;;  %v806_v14 = vpop.permute.xlu0 %805  ;;  %v973_v15 = vpop.permute.xlu1 %972 }
 0x1a0   : > { %1678 = vmatpush3.xpose.msk.msra.mxu0 %vm478_vm2, %v808_v13  ;;  %1679 = vmatprep.mubr.msk.f32.mxu0 %vm1956_vm0, %v1955_v0  ;;  %v1154_v13 = vld [vmem:[%s2404_s4 + $0x10] sm:$0xff] }
 0x1a1   : > { %1687 = vmatprep.subr.mxu0 %v1955_v0 }
 0x1a3   : > { %1680 = vmatmul.mubr.msk.f32.vlgmr.msra.gmra.mxu0 %vm478_vm2, %v806_v14  ;;  %v971_v16 = vpop.permute.xlu0 %970  ;;  %v1153_v14 = vld [vmem:[%s2404_s4 + $0x8] sm:$0xff] }
 0x1a4   : > { %1688 = vmatpush3.xpose.msk.msra.mxu0 %vm478_vm2, %v973_v15  ;;  %1689 = vmatprep.mubr.msk.f32.mxu0 %vm1956_vm0, %v1955_v0  ;;  %v1152_v15 = vld [vmem:[%s2404_s4] sm:$0xff] }
 0x1a5   : > { %1697 = vmatprep.subr.mxu0 %v1955_v0 }
 0x1a7   : > { %1690 = vmatmul.mubr.msk.f32.vlgmr.msra.gmra.mxu0 %vm478_vm2, %v971_v16 }
 0x1a8   : > { %1705 = vmatprep.mubr.msk.f32.mxu0 %vm1956_vm0, %v1955_v0 }
 0x25b   : > { %v549_v18 = vpop.f32.mrf.mxu1 }
 0x25c   : > { %v550_v19 = vadd.f32 %v1579_v17, %v549_v18 }
 0x25d   : > { %v1661_v20 = vpop.f32.mrf.mxu1 }
 0x25e   : > { %v553_v21 = vsel %vm478_vm2, %v550_v19, -inf }
 0x25f   : > { %v714_v22 = vpop.f32.mrf.mxu0  ;;  %554 = vmax.xlane.f32.xlu1 %v553_v21 }
 0x260   : > { %v715_v23 = vadd.f32 %v1579_v17, %v714_v22 }
 0x261   : > { %v1671_v24 = vpop.f32.mrf.mxu0 }
 0x262   : > { %v718_v25 = vsel %vm478_vm2, %v715_v23, -inf }
 0x263   : > { %719 = vmax.xlane.f32.xlu0 %v718_v25  ;;  %v879_v26 = vpop.f32.mrf.mxu0 }
 0x264   : > { %v880_v27 = vadd.f32 %v1579_v17, %v879_v26  ;;  %v1592_v26 = vld [vmem:[%s2408_s8] ss:$0 sm:$0xff] }
 0x265   : > { %v1681_v28 = vpop.f32.mrf.mxu0 }
 0x266   : > { %v883_v29 = vsel %vm478_vm2, %v880_v27, -inf }
 0x267   : > { %884 = vmax.xlane.f32.xlu0 %v883_v29  ;;  %v1044_v30 = vpop.f32.mrf.mxu0 }
 0x268   : > { %v1045_v31 = vadd.f32 %v1579_v17, %v1044_v30 }
 0x269   : > { %v1691_v32 = vpop.f32.mrf.mxu0 }
 0x26a   : > { %v1048_v33 = vsel %vm478_vm2, %v1045_v31, -inf }
 0x26b   : > { %1049 = vmax.xlane.f32.xlu1 %v1048_v33 }
 0x27c   : > { %729 = vrot.lane.b32.xlu1 %v2209_v8, %s1964_s26  ;;  %s1969_s26 = smov 16  }
 0x2e8   : > { %v555_v34 = vpop.xlane.xlu1 %554 }
 0x2e9   : > { %v556_v35 = vsub.f32 %v550_v19, %v555_v34 }
 0x2eb   : > { %v557_v36 = vmul.f32 1.442695, %v556_v35 }
 0x2ec   : > { %v720_v37 = vpop.xlane.xlu0 %719 }
 0x2ed   : > { %1805 = vpow2.f32 %v557_v36  ;;  %v721_v38 = vsub.f32 %v715_v23, %v720_v37  ;;  %v1264_v37 = vld [vmem:[%s2405_s5 + $0x18] sm:$0xff] }
 0x2ef   : > { %v722_v39 = vmul.f32 1.442695, %v721_v38  ;;  %v1263_v38 = vld [vmem:[%s2405_s5 + $0x10] sm:$0xff] }
 0x2f0   : > { %v885_v49 = vpop.xlane.xlu0 %884 }
 0x2f1   : > { %1807 = vpow2.f32 %v722_v39  ;;  %v886_v50 = vsub.f32 %v880_v27, %v885_v49  ;;  %v1261_v39 = vld [vmem:[%s2405_s5] sm:$0xff]  ;;  %v1357_v49 = vld [vmem:[%s2407_s7 + $0x38] sm:$0xff] }
 0x2f3   : > { %v887_v51 = vmul.f32 1.442695, %v886_v50  ;;  %v1356_v50 = vld [vmem:[%s2407_s7 + $0x30] sm:$0xff] }
 0x2f4   : > { %v1050_v40 = vpop.xlane.xlu1 %1049 }
 0x2f5   : > { %v1051_v41 = vsub.f32 %v1045_v31, %v1050_v40 }
 0x2f7   : > { %v1052_v42 = vmul.f32 1.442695, %v1051_v41 }
 0x2f8   : > { %v730_v54 = vpop.permute.xlu1 %729 }
 0x2f9   : > { %1809 = vpow2.f32 %v1052_v42 }
 0x2fa   : > { %v1806_v43 = vpop.eup %1805  ;;  %1811 = vpow2.f32 %v887_v51  ;;  %v1355_v51 = vld [vmem:[%s2407_s7 + $0x28] sm:$0xff] }
 0x2fb   : > { %v559_v44 = vsel %vm478_vm2, %v1806_v43, 0.0 }
 0x2fc   : > { %560 = vadd.xlane.f32.xlu0 %v559_v44  ;;  %v1594_v44 = vld [vmem:[%s2408_s8 + $0x2] ss:$0 sm:$0xff] }
 0x2fe   : > { %v1808_v45 = vpop.eup %1807 }
 0x2ff   : > { %v724_v46 = vsel %vm478_vm2, %v1808_v45, 0.0 }
 0x300   : > { %725 = vadd.xlane.f32.xlu1 %v724_v46  ;;  %v1595_v46 = vld [vmem:[%s2408_s8 + $0x3] ss:$0 sm:$0xff] }
 0x306   : > { %v1810_v47 = vpop.eup %1809 }
 0x307   : > { %v1054_v48 = vsel %vm478_vm2, %v1810_v47, 0.0  ;;  %v1812_v52 = vpop.eup %1811 }
 0x308   : > { %1055 = vadd.xlane.f32.xlu1 %v1054_v48  ;;  %v889_v53 = vsel %vm478_vm2, %v1812_v52, 0.0 }
 0x312   : > { %564 = vrot.lane.b32.xlu0 %v2209_v8, %s1965_s25  ;;  %s1970_s25 = smov 24  }
 0x319   : > { %894 = vrot.lane.b32.xlu1 %v2209_v8, %s1966_s23  ;;  %s381_s23 = scalar_lea.vmem [#allocation7], %s1575_s28 }
 0x331   : > { %890 = vadd.xlane.f32.xlu0 %v889_v53  ;;  %v1353_v53 = vld [vmem:[%s2407_s7 + $0x18] sm:$0xff] }
 0x347   : > { %1059 = vrot.lane.b32.xlu0 %v2209_v8, %s1967_s29  ;;  %v1155_v8 = vld [vmem:[%s2404_s4 + $0x18] sm:$0xff]  ;;  %s1478_s29 = sshll.u32 %s381_s23, 4  ;;  %s1479_s29 = int_to_ptr.vmem [resolvable:$true] %s1478_s29 }
 0x348   : > { %1698 = vmatpush3.msra.mxu0 %v1155_v8  ;;  %s1883_s27 = scalar_lea.vmem %s1479_s29, 128 }
 0x349   : > { %1699 = vmatprep.subr.mxu0 %v1955_v0  ;;  %p1884_p13 = scmp.ne.s32.totalorder %s1479_s29, %s1883_s27 }
 0x34a   : > { %1700 = vmatpush3.msra.mxu0 %v1154_v13 }
 0x34b   : > { %1701 = vmatprep.subr.mxu0 %v1955_v0  ;;  %p1885_p7 = pnand %p1884_p13, %p2427_p3 }
 0x34c   : > { %1702 = vmatpush3.msra.mxu0 %v1153_v14 }
 0x34d   : > { %1703 = vmatprep.subr.mxu0 %v1955_v0  ;;  %p1886_p8 = pneg %p1885_p7 }
 0x34e   : > { %1704 = vmatpush3.msra.mxu0 %v1152_v15 }
 0x34f   : > { %1719 = vmatprep.subr.mxu0 %v1955_v0 }
 0x385   : > { %v561_v55 = vpop.xlane.xlu0 %560 }
 0x386   : > { %1813 = vrcp.f32 %v561_v55  ;;  %v1351_v55 = vld [vmem:[%s2407_s7 + $0x8] sm:$0xff] }
 0x389   : > { %v565_v56 = vpop.permute.xlu0 %564  ;;  %v726_v57 = vpop.xlane.xlu1 %725 }
 0x38a   : > { %1815 = vrcp.f32 %v726_v57  ;;  %1663 = vmatpush3.msra.mxu1 %v565_v56  ;;  %v1350_v56 = vld [vmem:[%s2407_s7] sm:$0xff] }
 0x38b   : > { %1672 = vmatprep.subr.mxu1 %v1955_v0  ;;  %v1596_v57 = vld [vmem:[%s2406_s6] ss:$0 sm:$0xff] }
 0x391   : > { %v1056_v59 = vpop.xlane.xlu1 %1055 }
 0x393   : > { %v1814_v58 = vpop.eup %1813 }
 0x394   : > { %v563_v60 = vmul.f32 %v1814_v58, %v1806_v43 }
 0x395   : > { %v895_v63 = vpop.permute.xlu1 %894 }
 0x396   : > { %1665 = vmatmul.mubr.msk.f32.vlgmr.msra.gmra.mxu1 %vm478_vm2, %v563_v60 }
 0x397   : > { %v1816_v61 = vpop.eup %1815  ;;  %1673 = vmatpush3.msra.mxu1 %v730_v54  ;;  %1674 = vmatprep.mubr.msk.f32.mxu1 %vm1956_vm0, %v1955_v0  ;;  %v1352_v54 = vld [vmem:[%s2407_s7 + $0x10] sm:$0xff] }
 0x398   : > { %1682 = vmatprep.subr.mxu1 %v1955_v0  ;;  %v728_v62 = vmul.f32 %v1816_v61, %v1808_v45 }
 0x39a   : > { %1675 = vmatmul.mubr.msk.f32.vlgmr.msra.gmra.mxu1 %vm478_vm2, %v728_v62 }
 0x39b   : > { %1683 = vmatpush3.msra.mxu1 %v895_v63  ;;  %1684 = vmatprep.mubr.msk.f32.mxu1 %vm1956_vm0, %v1955_v0 }
 0x39c   : > { %1692 = vmatprep.subr.mxu1 %v1955_v0 }
 0x3ba   : > { %v891_v1 = vpop.xlane.xlu0 %890 }
 0x3bb   : > { %1817 = vrcp.f32 %v891_v1 }
 0x3bc   : > { %1819 = vrcp.f32 %v1056_v59 }
 0x3be   : > { %v1060_v6 = vpop.permute.xlu0 %1059 }
 0x3c8   : > { %v1818_v2 = vpop.eup %1817 }
 0x3c9   : > { %v893_v3 = vmul.f32 %v1818_v2, %v1812_v52  ;;  %v1820_v4 = vpop.eup %1819  ;;  %v1354_v52 = vld [vmem:[%s2407_s7 + $0x20] sm:$0xff] }
 0x3ca   : > { %v1058_v7 = vmul.f32 %v1820_v4, %v1810_v47 }
 0x3cb   : > { %1685 = vmatmul.mubr.msk.f32.vlgmr.msra.gmra.mxu1 %vm478_vm2, %v893_v3 }
 0x3cc   : > { %1693 = vmatpush3.msra.mxu1 %v1060_v6  ;;  %1694 = vmatprep.mubr.msk.f32.mxu1 %vm1956_vm0, %v1955_v0 }
 0x3cd   : > { %1708 = vmatprep.subr.mxu1 %v1955_v0 }
 0x3cf   : > { %1695 = vmatmul.mubr.msk.f32.vlgmr.msra.gmra.mxu1 %vm478_vm2, %v1058_v7 }
 0x3d0   : > { %1716 = vmatprep.mubr.msk.f32.mxu1 %vm1956_vm0, %v1955_v0  ;;  %1709 = vmatpush3.msra.mxu1 %v1264_v37 }
 0x3d1   : > { %1710 = vmatprep.subr.mxu1 %v1955_v0 }
 0x3d2   : > { %1711 = vmatpush3.msra.mxu1 %v1263_v38 }
 0x3d3   : > { %1712 = vmatprep.subr.mxu1 %v1955_v0 }
 0x456   : > { %v636_v9 = vpop.f32.mrf.mxu1 }
 0x458   : > { %v1666_v10 = vpop.f32.mrf.mxu1 }
 0x45a   : > { %v801_v11 = vpop.f32.mrf.mxu1 }
 0x45b   : > { %1136 = vrot.lane.b32.xlu1 %v801_v11, %s1968_s18 }
 0x45c   : > { %v1676_v12 = vpop.f32.mrf.mxu1 }
 0x48b   : > { %v966_v16 = vpop.f32.mrf.mxu1 }
 0x48c   : > { %1140 = vrot.lane.b32.xlu0 %v966_v16, %s1969_s26 }
 0x48d   : > { %v1686_v17 = vpop.f32.mrf.mxu1 }
 0x48f   : > { %v1131_v18 = vpop.f32.mrf.mxu1 }
 0x490   : > { %1144 = vrot.lane.b32.xlu1 %v1131_v18, %s1970_s25  ;;  %v1600_v18 = vld [vmem:[%s2408_s8 + $0x4] ss:$0 sm:$0xff]  ;;  %s1603_s25 = sshll.u32 %s2043_s13, 7  ;;  %s1887_s13 = sshll.u32 %s1971_s19, 4  ;;  %s1888_s13 = int_to_ptr.vmem [resolvable:$false] %s1887_s13 }
 0x491   : > { %v1696_v19 = vpop.f32.mrf.mxu1  ;;  %s1476_s18 = scalar_lea.hbm %s2409_s9, %s1603_s25  ;;  %s1889_s28 = scalar_lea.vmem %s1888_s13, 256 }
 0x492   : > { %p1890_p10 = scmp.lt.s32.totalorder %s1479_s29, %s1888_s13  ;;  %p1891_p2 = scmp.lt.s32.totalorder %s1889_s28, %s1883_s27 }
 0x494   : > { %p1892_p4 = por %p1891_p2, %p1890_p10 }
 0x496   : > { %p1893_p5 = pnand %p1892_p4, %p1886_p8 }
 0x4cd   : > { %v1137_v20 = vpop.permute.xlu1 %1136 }
 0x4ce   : > { %v1147_v22 = vsel %vm478_vm2, %v636_v9, %v1137_v20  ;;  %v1601_v20 = vld [vmem:[%s2408_s8 + $0x5] ss:$0 sm:$0xff] }
 0x4fe   : > { %v1141_v21 = vpop.permute.xlu0 %1140 }
 0x4ff   : > { %v1149_v23 = vsel %vm1148_vm3, %v1147_v22, %v1141_v21 }
 0x502   : > { %v1145_v24 = vpop.permute.xlu1 %1144 }
 0x503   : > { %v1151_v25 = vsel %vm1150_vm4, %v1149_v23, %v1145_v24 }
 0x504   : > { %1706 = vmatmul.mubr.msk.f32.vlgmr.msra.gmra.mxu0 %vm395_vm1, %v1151_v25 }
 0x505   : > { %1735 = vmatprep.mubr.msk.f32.mxu0 %vm1956_vm0, %v1955_v0  ;;  %1720 = vmatpush3.msra.mxu0 %v1357_v49 }
 0x506   : > { %1721 = vmatprep.subr.mxu0 %v1955_v0 }
 0x507   : > { %1722 = vmatpush3.msra.mxu0 %v1356_v50 }
 0x508   : > { %1723 = vmatprep.subr.mxu0 %v1955_v0 }
 0x509   : > { %1724 = vmatpush3.msra.mxu0 %v1355_v51 }
 0x50a   : > { %1725 = vmatprep.subr.mxu0 %v1955_v0 }
 0x50b   : > { %1726 = vmatpush3.msra.mxu0 %v1354_v52 }
 0x50c   : > { %1727 = vmatprep.subr.mxu0 %v1955_v0 }
 0x50d   : > { %1728 = vmatpush3.msra.mxu0 %v1353_v53 }
 0x50e   : > { %1729 = vmatprep.subr.mxu0 %v1955_v0 }
 0x50f   : > { %1730 = vmatpush3.msra.mxu0 %v1352_v54 }
 0x510   : > { %1731 = vmatprep.subr.mxu0 %v1955_v0 }
 0x511   : > { %1732 = vmatpush3.msra.mxu0 %v1351_v55 }
 0x512   : > { %1733 = vmatprep.subr.mxu0 %v1955_v0 }
 0x513   : > { %1734 = vmatpush3.msra.mxu0 %v1350_v56 }
 0x5c4   : > { %v1230_v27 = vpop.f32.mrf.mxu0 }
 0x5c5   : > { %v1231_v28 = vadd.f32 %v1592_v26, %v1230_v27 }
 0x5c6   : > { %v1707_v29 = vpop.f32.mrf.mxu0 }
 0x5c7   : > { %v1234_v30 = vadd.f32 %v1231_v28, %v2198_v5  ;;  %v1262_v5 = vld [vmem:[%s2405_s5 + $0x8] sm:$0xff] }
 0x5c8   : > { %1713 = vmatpush3.msra.mxu1 %v1262_v5 }
 0x5c9   : > { %v1237_v31 = vsel %vm395_vm1, %v1234_v30, 0.0  ;;  %1714 = vmatprep.subr.mxu1 %v1955_v0  ;;  %v1598_v0 = vld [vmem:[%s2408_s8 + $0x1] ss:$0 sm:$0xff] }
 0x5ca   : > { %1238 = vadd.xlane.f32.xlu0 %v1237_v31  ;;  %1715 = vmatpush3.msra.mxu1 %v1261_v39 }
 0x653   : > { %v1239_v32 = vpop.xlane.xlu0 %1238 }
 0x654   : > { %v1241_v33 = vmul.f32 0.03125, %v1239_v32 }
 0x656   : > { %v1242_v34 = vsub.f32 %v1234_v30, %v1241_v33 }
 0x658   : > { %v1243_v35 = vmul.f32 %v1242_v34, %v1242_v34 }
 0x65a   : > { %v1244_v36 = vsel %vm395_vm1, %v1243_v35, 0.0 }
 0x65b   : > { %1245 = vadd.xlane.f32.xlu1 %v1244_v36 }
 0x6e4   : > { %v1246_v40 = vpop.xlane.xlu1 %1245 }
 0x6e5   : > { %v1247_v41 = vmul.f32 0.03125, %v1246_v40 }
 0x6e7   : > { %v1248_v42 = vadd.f32 1e-12, %v1247_v41 }
 0x6e9   : > { %1821 = vrsqrt.f32 %v1248_v42 }
 0x6f6   : > { %v1822_v43 = vpop.eup %1821 }
 0x6f7   : > { %v1250_v45 = vmul.f32 %v1822_v43, %v1242_v34 }
 0x6f9   : > { %v1255_v47 = vmul.f32 %v1594_v44, %v1250_v45 }
 0x6fb   : > { %v1260_v48 = vadd.f32 %v1595_v46, %v1255_v47 }
 0x6fd   : > { %1717 = vmatmul.mubr.msk.f32.vlgmr.msra.gmra.mxu1 %vm395_vm1, %v1260_v48 }
 0x7bd   : > { %v1341_v58 = vpop.f32.mrf.mxu1 }
 0x7be   : > { %v1342_v59 = vadd.f32 %v1596_v57, %v1341_v58 }
 0x7bf   : > { %v1718_v60 = vpop.f32.mrf.mxu1 }
 0x7c0   : > { %v1346_v61 = vmul.f32 0.70710677, %v1342_v59  ;;  %v1345_v63 = vmul.f32 0.5, %v1342_v59 }
 0x7c2   : > { %1823 = verf.f32 %v1346_v61 }
 0x7cf   : > { %v1824_v62 = vpop.eup %1823 }
 0x7d0   : > { %v1348_v1 = vadd.f32 1.0, %v1824_v62 }
 0x7d2   : > { %v1349_v2 = vmul.f32 %v1348_v1, %v1345_v63 }
 0x7d4   : > { %1736 = vmatmul.mubr.msk.f32.vlgmr.msra.gmra.mxu0 %vm1363_vm5, %v1349_v2 }
 0x894   : > { %v1433_v3 = vpop.f32.mrf.mxu0 }
 0x895   : > { %v1434_v4 = vadd.f32 %v1598_v0, %v1433_v3 }
 0x896   : > { %v1737_v6 = vpop.f32.mrf.mxu0 }
 0x897   : > { %v1437_v7 = vadd.f32 %v1434_v4, %v1260_v48 }
 0x899   : > { %v1440_v8 = vsel %vm395_vm1, %v1437_v7, 0.0 }
 0x89a   : > { %1441 = vadd.xlane.f32.xlu0 %v1440_v8 }
 0x923   : > { %v1442_v9 = vpop.xlane.xlu0 %1441 }
 0x924   : > { %v1443_v10 = vmul.f32 0.03125, %v1442_v9 }
 0x926   : > { %v1444_v11 = vsub.f32 %v1437_v7, %v1443_v10 }
 0x928   : > { %v1445_v12 = vmul.f32 %v1444_v11, %v1444_v11 }
 0x92a   : > { %v1446_v13 = vsel %vm395_vm1, %v1445_v12, 0.0 }
 0x92b   : > { %1447 = vadd.xlane.f32.xlu0 %v1446_v13 }
 0x9b4   : > { %v1448_v14 = vpop.xlane.xlu0 %1447 }
 0x9b5   : > { %v1449_v15 = vmul.f32 0.03125, %v1448_v14 }
 0x9b7   : > { %v1450_v16 = vadd.f32 1e-12, %v1449_v15 }
 0x9b9   : > { %1825 = vrsqrt.f32 %v1450_v16 }
 0x9c6   : > { %v1826_v17 = vpop.eup %1825 }
 0x9c7   : > { %v1452_v19 = vmul.f32 %v1826_v17, %v1444_v11 }
 0x9c9   : > { %v1457_v21 = vmul.f32 %v1600_v18, %v1452_v19 }
 0x9cb   : > { %v1462_v22 = vadd.f32 %v1601_v20, %v1457_v21 }
 0x9cd   : > { %1463 = vst.msk [vmem:[%s381_s23] sm:$0xff] %vm395_vm1, %v1462_v22 }
 0x9ce   : > { %1896 = shalt.err (!%p1893_p5)
}
 0x9cf   : > { %s1897_s24 = scalar_lea.hbm %s1476_s18, 128  ;;  %s1901_s20 = scalar_lea.hbm %s2409_s9, 256 }
 0x9d0   : > { %p1898_p9 = scmp.ne.s32.totalorder %s1476_s18, %s1897_s24  ;;  %p1902_p12 = scmp.lt.s32.totalorder %s1476_s18, %s2409_s9 }
 0x9d1   : > { %p1903_p1 = scmp.lt.s32.totalorder %s1901_s20, %s1897_s24 }
 0x9d2   : > { %p1899_p0 = pnand %p1898_p9, %p2427_p3 }
 0x9d3   : > { %p1904_p6 = por %p1903_p1, %p1902_p12 }
 0x9d4   : > { %p1900_p11 = pneg %p1899_p0 }
 0x9d6   : > { %p1905_p13 = pnand %p1904_p6, %p1900_p11 }
 0x9d8   : > { %1908 = shalt.err (!%p1905_p13)
}
 0x9d9   : > { %1742 = dma.vmem_to_hbm [thread:$0]  (%p2427_p3), %s1479_s29, 128, %s1476_s18, %s1465_s16  }
 0x9da PF: > { %s1490_s23 = sand.u32 1, %s1939_s30   ;;  %p2428_p7 = scmp.ne.s32.totalorder %s2419_s22, 0 }
 0x9db   : > { %p2429_p8 = scmp.ge.s32.totalorder %s1951_s12, 2  ;;  %s1491_s14 = scalar_lea.sflag [#allocation4], %s1490_s23 }
 0x9dd   : > { %p1752_p10 = pnand %p2429_p8, %p2428_p7 }
 0x9df   : > { %p1753_p2 = pneg %p1752_p10 }
 0x9e1   : > { %1934 = dma.done.wait (%p1753_p2), %s1491_s14, 128  }
 0x9e2   : > { %1936 = vsyncadd (%p1753_p2), %s1491_s14, 4294967168  ;;  %s2430_s17 = sld [smem:[#allocation11_spill]]  ;;  %p25_p4 = scmp.ge.s32.totalorder %s2047_s15, 4  }
 0x9e3   : > { %s2431_s11 = sld [smem:[#allocation12_spill]]  ;;  %s2432_s30 = smov %s1943_s10 }
 0x9e4   : > { %s2434_s12 = smov %s2047_s15  ;;  %27 = sbr.rel (!%p25_p4) target bundleno = 9 (0x9), region = 114 }
 0x9e8   : > { %s2433_s10 = smov %s2430_s17 }
 0x9e9   :  { %1496 = vsyncpa [#allocation3], 1 }
 0x9ea   :  { %1498 = vsyncpa [#allocation3 + $0x1], 1 }
 0x9eb   :  { %1499 = vsyncpa [#allocation6], 1 }
 0x9ec   :  { %1501 = vsyncpa [#allocation6 + $0x1], 1 }
 0x9ed   :  { %1502 = vsyncpa [#allocation4], 1 }
 0x9ee   :  { %1504 = vsyncpa [#allocation4 + $0x1], 1 }

</bundles_post_ra>
